<compile_context>
chip_gen: v5e
topology: v5e:2x2
jax: 0.10.0
libtpu: 0.0.40
codegen_flags: <defaults>
</compile_context>

<pallas_src>
import functools

import jax
import jax.numpy as jnp
from jax.experimental import pallas as pl
from jax.experimental.pallas import tpu as pltpu


def _round_up(x, m):
    return ((x + m - 1) // m) * m


# ----------------------------------------------------------------------------
# Fused Pallas kernel: conv(3x3,pad=1)+ReLU -> flatten -> actor softmax + critic
# ----------------------------------------------------------------------------
def _fused_actor_critic_kernel(
    xcol_ref,   # (Kp, B*HW)  bf16  im2col activations (K = 9*Cin, zero-padded to Kp)
    wc_ref,     # (Cout, Kp)  bf16  conv weight, K ordered (tap-major, cin-minor)
    bc_ref,     # (Cout, 1)   f32   conv bias (column)
    wh_ref,     # (F, NP)     bf16  merged [actor | critic | 0] head weight, F = Cout*H*W
    bh_ref,     # (1, NP)     f32   merged head bias
    out_ref,    # (B, NP)     f32   [actor probs | critic value | zeros]
    featB_ref,  # (B, F)      f32   VMEM scratch: features in PyTorch .view(B,-1) order
    *, hw, num_actions,
):
    cout = wc_ref.shape[0]
    bsz, np_lanes = out_ref.shape

    # ---- 1) conv for the WHOLE batch as one MXU contraction (M=Cout, K=Kp, N=B*HW) ----
    feat = jnp.dot(wc_ref[...], xcol_ref[...],
                   preferred_element_type=jnp.float32)            # (Cout, B*HW) f32
    feat = jnp.maximum(feat + bc_ref[...], 0.0)                   # bias + ReLU

    # ---- 2) relayout (Cout, B*HW) -> (B, Cout*HW) via aligned VMEM stores.
    #         HW is a multiple of 128, so every slice below is lane-aligned;
    #         B*Cout tiny copies (~16 KB total) through the scratch. ----
    for c in range(cout):
        for b in range(bsz):
            featB_ref[b:b + 1, c * hw:(c + 1) * hw] = \
                feat[c:c + 1, b * hw:(b + 1) * hw]

    # ---- 3) head: ONE (B, F) @ (F, NP) matmul (actor + critic fused, F = 2048 here) ----
    head = jnp.dot(featB_ref[...].astype(wh_ref.dtype), wh_ref[...],
                   preferred_element_type=jnp.float32) + bh_ref[...]   # (B, NP)

    # ---- 4) masked softmax over the first `num_actions` lanes; lane A = critic value ----
    col = jax.lax.broadcasted_iota(jnp.int32, (bsz, np_lanes), 1)
    amask = col < num_actions
    masked = jnp.where(amask, head, jnp.float32(-1e30))
    m = jnp.max(masked, axis=-1, keepdims=True)
    e = jnp.where(amask, jnp.exp(masked - m), 0.0)
    denom = jnp.sum(e, axis=-1, keepdims=True)
    probs = e / denom                                   # exact divide (per review)
    out_ref[...] = probs + jnp.where(col == num_actions, head, 0.0)


# ----------------------------------------------------------------------------
# One-time weight packing (hoisted off the hot path)
# ----------------------------------------------------------------------------
def prepare_params(params, num_actions):
    conv_w, conv_b, actor_w, actor_b, critic_w, critic_b = params
    cout, cin, kh, kw = conv_w.shape
    k = kh * kw * cin
    kp = _round_up(k, 16)                     # clean bf16 sublane tiling for the rhs
    a = num_actions
    np_lanes = _round_up(a + 1, 128)          # lane-dense merged head width
    f_dim = actor_w.shape[0]                  # = cout * H * W

    # conv weight -> (Cout, Kp), K index = (di*3+dj)*Cin + cin  (matches im2col below)
    wc = conv_w.transpose(0, 2, 3, 1).reshape(cout, k)
    wc = jnp.pad(wc, ((0, 0), (0, kp - k))).astype(jnp.bfloat16)
    bc = conv_b.reshape(cout, 1).astype(jnp.float32)

    # merged [actor | critic | zeros] head weight; row order = PyTorch .view(B,-1)
    # feature order (c, h, w), so NO runtime reordering and no padded-spatial rows.
    wh = jnp.concatenate(
        [actor_w, critic_w,
         jnp.zeros((f_dim, np_lanes - a - 1), actor_w.dtype)], axis=1
    ).astype(jnp.bfloat16)                    # (F, NP)
    bh = jnp.concatenate(
        [actor_b, critic_b, jnp.zeros((np_lanes - a - 1,), actor_b.dtype)]
    ).reshape(1, np_lanes).astype(jnp.float32)
    return wc, bc, wh, bh


# ----------------------------------------------------------------------------
# Hot-path forward
# ----------------------------------------------------------------------------
@functools.partial(jax.jit, static_argnames=("num_actions",))
def actor_critic_forward(x, packed, num_actions):
    wc, bc, wh, bh = packed
    b, cin, h, w = x.shape
    hw = h * w
    cout, kp = wc.shape
    f_dim, np_lanes = wh.shape
    k = 9 * cin

    # ---- im2col (tap-major, cin-minor) -> (Kp, B*HW) bf16 (~36 KB at these sizes) ----
    x_pad = jnp.pad(x, ((0, 0), (0, 0), (1, 1), (1, 1)))              # (B,Cin,Hp,Wp)
    taps = [x_pad[:, :, di:di + h, dj:dj + w]
            for di in range(3) for dj in range(3)]                    # 9 x (B,Cin,H,W)
    xcol = jnp.stack(taps, axis=1).reshape(b, k, hw)                  # (B, K, HW)
    xcol = xcol.transpose(1, 0, 2).reshape(k, b * hw)                 # (K, B*HW)
    xcol = jnp.pad(xcol, ((0, kp - k), (0, 0))).astype(jnp.bfloat16)  # (Kp, B*HW)

    kernel = functools.partial(_fused_actor_critic_kernel,
                               hw=hw, num_actions=num_actions)
    out = pl.pallas_call(
        kernel,
        out_shape=jax.ShapeDtypeStruct((b, np_lanes), jnp.float32),
        in_specs=[pl.BlockSpec(memory_space=pltpu.MemorySpace.VMEM)] * 5,
        out_specs=pl.BlockSpec(memory_space=pltpu.MemorySpace.VMEM),
        scratch_shapes=[pltpu.VMEM((b, f_dim), jnp.float32)],
    )(xcol, wc, bc, wh, bh)

    actor = out[:, :num_actions]              # (B, A) softmax probs
    critic = out[:, num_actions:num_actions + 1]  # (B, 1) value
    return actor, critic


# ----------------------------------------------------------------------------
# Pure-JAX reference (f32) for correctness check
# ----------------------------------------------------------------------------
def _reference_forward(x, params):
    conv_w, conv_b, actor_w, actor_b, critic_w, critic_b = params
    conv = jax.lax.conv_general_dilated(
        x, conv_w, window_strides=(1, 1), padding=((1, 1), (1, 1)),
        dimension_numbers=("NCHW", "OIHW", "NCHW"))
    feat = jnp.maximum(conv + conv_b[None, :, None, None], 0.0)
    feat = feat.reshape(x.shape[0], -1)
    logits = feat @ actor_w + actor_b
    actor = jax.nn.softmax(logits, axis=-1)
    critic = feat @ critic_w + critic_b
    return actor, critic


def init_params(key, cin, cout, h, w, num_actions):
    feat_dim = cout * h * w
    k = jax.random.split(key, 6)
    conv_w = 0.05 * jax.random.normal(k[0], (cout, cin, 3, 3), jnp.float32)
    conv_b = 0.05 * jax.random.normal(k[1], (cout,), jnp.float32)
    actor_w = 0.02 * jax.random.normal(k[2], (feat_dim, num_actions), jnp.float32)
    actor_b = 0.02 * jax.random.normal(k[3], (num_actions,), jnp.float32)
    critic_w = 0.02 * jax.random.normal(k[4], (feat_dim, 1), jnp.float32)
    critic_b = 0.02 * jax.random.normal(k[5], (1,), jnp.float32)
    return conv_w, conv_b, actor_w, actor_b, critic_w, critic_b


if __name__ == "__main__":
    B, CIN, H, W = 2, 4, 16, 16
    COUT = 8
    NUM_ACTIONS = 6

    key = jax.random.PRNGKey(0)
    kx, kp = jax.random.split(key)
    x = jax.random.normal(kx, (B, CIN, H, W), jnp.float32)
    params = init_params(kp, CIN, COUT, H, W, NUM_ACTIONS)

    packed = prepare_params(params, NUM_ACTIONS)      # one-time weight packing
    actor, critic = actor_critic_forward(x, packed, NUM_ACTIONS)
    jax.block_until_ready((actor, critic))

    assert actor.shape == (B, NUM_ACTIONS)
    assert critic.shape == (B, 1)
    # exact softmax divide -> rows sum to 1 to f32 rounding
    assert jnp.allclose(jnp.sum(actor, axis=-1), 1.0, atol=1e-4)

    actor_ref, critic_ref = _reference_forward(x, params)
    # bf16 inputs/weights with f32 accumulation -> loose-but-safe tolerances
    assert jnp.allclose(actor, actor_ref, atol=2e-2), \
        float(jnp.max(jnp.abs(actor - actor_ref)))
    assert jnp.allclose(critic, critic_ref, atol=2e-2), \
        float(jnp.max(jnp.abs(critic - critic_ref)))
    print("KERNEL_OK")
</pallas_src>

<mosaic_0001>
module attributes {stable_mosaic.version = 11 : i64} {
  func.func @_fused_actor_critic_kernel(%arg0: memref<48x512xbf16, #tpu.memory_space<vmem>>, %arg1: memref<8x48xbf16, #tpu.memory_space<vmem>>, %arg2: memref<8x1xf32, #tpu.memory_space<vmem>>, %arg3: memref<2048x128xbf16, #tpu.memory_space<vmem>>, %arg4: memref<1x128xf32, #tpu.memory_space<vmem>>, %arg5: memref<2x128xf32, #tpu.memory_space<vmem>>, %arg6: memref<2x2048xf32, #tpu.memory_space<vmem>>) attributes {dimension_semantics = [], scalar_prefetch = 0 : i64, scratch_operands = 1 : i64, tpu.core_type = #tpu.core_type<tc>} {
    %c0 = arith.constant 0 : index
    %c0_0 = arith.constant 0 : index
    %0 = vector.load %arg1[%c0, %c0_0] : memref<8x48xbf16, #tpu.memory_space<vmem>>, vector<8x48xbf16>
    %c0_1 = arith.constant 0 : index
    %c0_2 = arith.constant 0 : index
    %1 = vector.load %arg0[%c0_1, %c0_2] : memref<48x512xbf16, #tpu.memory_space<vmem>>, vector<48x512xbf16>
    %cst = arith.constant dense<0.000000e+00> : vector<8x512xf32>
    %2 = tpu.matmul %0, %1, %cst {dimension_numbers = #tpu.dot_dimension_numbers<[1], [0], [0], [1], [0, 0, 1, 1], [], []>} : vector<8x48xbf16>, vector<48x512xbf16>, vector<8x512xf32> -> vector<8x512xf32>
    %c0_3 = arith.constant 0 : index
    %c0_4 = arith.constant 0 : index
    %3 = vector.load %arg2[%c0_3, %c0_4] : memref<8x1xf32, #tpu.memory_space<vmem>>, vector<8x1xf32>
    %4 = vector.broadcast %3 : vector<8x1xf32> to vector<8x512xf32>
    %5 = arith.addf %2, %4 : vector<8x512xf32>
    %cst_5 = arith.constant 0.000000e+00 : f32
    %6 = vector.broadcast %cst_5 : f32 to vector<8x512xf32>
    %7 = arith.maximumf %5, %6 : vector<8x512xf32>
    %8 = vector.extract_strided_slice %7 {offsets = [0, 0], sizes = [1, 256], strides = [1, 1]} : vector<8x512xf32> to vector<1x256xf32>
    %c0_6 = arith.constant 0 : index
    %c0_7 = arith.constant 0 : index
    %9 = vector.load %arg6[%c0_6, %c0_7] : memref<2x2048xf32, #tpu.memory_space<vmem>>, vector<1x256xf32>
    tpu.vector_store %arg6[%c0_6, %c0_7], %8 {strides = array<i32>} : memref<2x2048xf32, #tpu.memory_space<vmem>>, vector<1x256xf32>,
    %10 = vector.extract_strided_slice %7 {offsets = [0, 256], sizes = [1, 256], strides = [1, 1]} : vector<8x512xf32> to vector<1x256xf32>
    %c1 = arith.constant 1 : index
    %c0_8 = arith.constant 0 : index
    %11 = vector.load %arg6[%c1, %c0_8] : memref<2x2048xf32, #tpu.memory_space<vmem>>, vector<1x256xf32>
    tpu.vector_store %arg6[%c1, %c0_8], %10 {strides = array<i32>} : memref<2x2048xf32, #tpu.memory_space<vmem>>, vector<1x256xf32>,
    %12 = vector.extract_strided_slice %7 {offsets = [1, 0], sizes = [1, 256], strides = [1, 1]} : vector<8x512xf32> to vector<1x256xf32>
    %c0_9 = arith.constant 0 : index
    %c256 = arith.constant 256 : index
    %13 = vector.load %arg6[%c0_9, %c256] : memref<2x2048xf32, #tpu.memory_space<vmem>>, vector<1x256xf32>
    tpu.vector_store %arg6[%c0_9, %c256], %12 {strides = array<i32>} : memref<2x2048xf32, #tpu.memory_space<vmem>>, vector<1x256xf32>,
    %14 = vector.extract_strided_slice %7 {offsets = [1, 256], sizes = [1, 256], strides = [1, 1]} : vector<8x512xf32> to vector<1x256xf32>
    %c1_10 = arith.constant 1 : index
    %c256_11 = arith.constant 256 : index
    %15 = vector.load %arg6[%c1_10, %c256_11] : memref<2x2048xf32, #tpu.memory_space<vmem>>, vector<1x256xf32>
    tpu.vector_store %arg6[%c1_10, %c256_11], %14 {strides = array<i32>} : memref<2x2048xf32, #tpu.memory_space<vmem>>, vector<1x256xf32>,
    %16 = vector.extract_strided_slice %7 {offsets = [2, 0], sizes = [1, 256], strides = [1, 1]} : vector<8x512xf32> to vector<1x256xf32>
    %c0_12 = arith.constant 0 : index
    %c512 = arith.constant 512 : index
    %17 = vector.load %arg6[%c0_12, %c512] : memref<2x2048xf32, #tpu.memory_space<vmem>>, vector<1x256xf32>
    tpu.vector_store %arg6[%c0_12, %c512], %16 {strides = array<i32>} : memref<2x2048xf32, #tpu.memory_space<vmem>>, vector<1x256xf32>,
    %18 = vector.extract_strided_slice %7 {offsets = [2, 256], sizes = [1, 256], strides = [1, 1]} : vector<8x512xf32> to vector<1x256xf32>
    %c1_13 = arith.constant 1 : index
    %c512_14 = arith.constant 512 : index
    %19 = vector.load %arg6[%c1_13, %c512_14] : memref<2x2048xf32, #tpu.memory_space<vmem>>, vector<1x256xf32>
    tpu.vector_store %arg6[%c1_13, %c512_14], %18 {strides = array<i32>} : memref<2x2048xf32, #tpu.memory_space<vmem>>, vector<1x256xf32>,
    %20 = vector.extract_strided_slice %7 {offsets = [3, 0], sizes = [1, 256], strides = [1, 1]} : vector<8x512xf32> to vector<1x256xf32>
    %c0_15 = arith.constant 0 : index
    %c768 = arith.constant 768 : index
    %21 = vector.load %arg6[%c0_15, %c768] : memref<2x2048xf32, #tpu.memory_space<vmem>>, vector<1x256xf32>
    tpu.vector_store %arg6[%c0_15, %c768], %20 {strides = array<i32>} : memref<2x2048xf32, #tpu.memory_space<vmem>>, vector<1x256xf32>,
    %22 = vector.extract_strided_slice %7 {offsets = [3, 256], sizes = [1, 256], strides = [1, 1]} : vector<8x512xf32> to vector<1x256xf32>
    %c1_16 = arith.constant 1 : index
    %c768_17 = arith.constant 768 : index
    %23 = vector.load %arg6[%c1_16, %c768_17] : memref<2x2048xf32, #tpu.memory_space<vmem>>, vector<1x256xf32>
    tpu.vector_store %arg6[%c1_16, %c768_17], %22 {strides = array<i32>} : memref<2x2048xf32, #tpu.memory_space<vmem>>, vector<1x256xf32>,
    %24 = vector.extract_strided_slice %7 {offsets = [4, 0], sizes = [1, 256], strides = [1, 1]} : vector<8x512xf32> to vector<1x256xf32>
    %c0_18 = arith.constant 0 : index
    %c1024 = arith.constant 1024 : index
    %25 = vector.load %arg6[%c0_18, %c1024] : memref<2x2048xf32, #tpu.memory_space<vmem>>, vector<1x256xf32>
    tpu.vector_store %arg6[%c0_18, %c1024], %24 {strides = array<i32>} : memref<2x2048xf32, #tpu.memory_space<vmem>>, vector<1x256xf32>,
    %26 = vector.extract_strided_slice %7 {offsets = [4, 256], sizes = [1, 256], strides = [1, 1]} : vector<8x512xf32> to vector<1x256xf32>
    %c1_19 = arith.constant 1 : index
    %c1024_20 = arith.constant 1024 : index
    %27 = vector.load %arg6[%c1_19, %c1024_20] : memref<2x2048xf32, #tpu.memory_space<vmem>>, vector<1x256xf32>
    tpu.vector_store %arg6[%c1_19, %c1024_20], %26 {strides = array<i32>} : memref<2x2048xf32, #tpu.memory_space<vmem>>, vector<1x256xf32>,
    %28 = vector.extract_strided_slice %7 {offsets = [5, 0], sizes = [1, 256], strides = [1, 1]} : vector<8x512xf32> to vector<1x256xf32>
    %c0_21 = arith.constant 0 : index
    %c1280 = arith.constant 1280 : index
    %29 = vector.load %arg6[%c0_21, %c1280] : memref<2x2048xf32, #tpu.memory_space<vmem>>, vector<1x256xf32>
    tpu.vector_store %arg6[%c0_21, %c1280], %28 {strides = array<i32>} : memref<2x2048xf32, #tpu.memory_space<vmem>>, vector<1x256xf32>,
    %30 = vector.extract_strided_slice %7 {offsets = [5, 256], sizes = [1, 256], strides = [1, 1]} : vector<8x512xf32> to vector<1x256xf32>
    %c1_22 = arith.constant 1 : index
    %c1280_23 = arith.constant 1280 : index
    %31 = vector.load %arg6[%c1_22, %c1280_23] : memref<2x2048xf32, #tpu.memory_space<vmem>>, vector<1x256xf32>
    tpu.vector_store %arg6[%c1_22, %c1280_23], %30 {strides = array<i32>} : memref<2x2048xf32, #tpu.memory_space<vmem>>, vector<1x256xf32>,
    %32 = vector.extract_strided_slice %7 {offsets = [6, 0], sizes = [1, 256], strides = [1, 1]} : vector<8x512xf32> to vector<1x256xf32>
    %c0_24 = arith.constant 0 : index
    %c1536 = arith.constant 1536 : index
    %33 = vector.load %arg6[%c0_24, %c1536] : memref<2x2048xf32, #tpu.memory_space<vmem>>, vector<1x256xf32>
    tpu.vector_store %arg6[%c0_24, %c1536], %32 {strides = array<i32>} : memref<2x2048xf32, #tpu.memory_space<vmem>>, vector<1x256xf32>,
    %34 = vector.extract_strided_slice %7 {offsets = [6, 256], sizes = [1, 256], strides = [1, 1]} : vector<8x512xf32> to vector<1x256xf32>
    %c1_25 = arith.constant 1 : index
    %c1536_26 = arith.constant 1536 : index
    %35 = vector.load %arg6[%c1_25, %c1536_26] : memref<2x2048xf32, #tpu.memory_space<vmem>>, vector<1x256xf32>
    tpu.vector_store %arg6[%c1_25, %c1536_26], %34 {strides = array<i32>} : memref<2x2048xf32, #tpu.memory_space<vmem>>, vector<1x256xf32>,
    %36 = vector.extract_strided_slice %7 {offsets = [7, 0], sizes = [1, 256], strides = [1, 1]} : vector<8x512xf32> to vector<1x256xf32>
    %c0_27 = arith.constant 0 : index
    %c1792 = arith.constant 1792 : index
    %37 = vector.load %arg6[%c0_27, %c1792] : memref<2x2048xf32, #tpu.memory_space<vmem>>, vector<1x256xf32>
    tpu.vector_store %arg6[%c0_27, %c1792], %36 {strides = array<i32>} : memref<2x2048xf32, #tpu.memory_space<vmem>>, vector<1x256xf32>,
    %38 = vector.extract_strided_slice %7 {offsets = [7, 256], sizes = [1, 256], strides = [1, 1]} : vector<8x512xf32> to vector<1x256xf32>
    %c1_28 = arith.constant 1 : index
    %c1792_29 = arith.constant 1792 : index
    %39 = vector.load %arg6[%c1_28, %c1792_29] : memref<2x2048xf32, #tpu.memory_space<vmem>>, vector<1x256xf32>
    tpu.vector_store %arg6[%c1_28, %c1792_29], %38 {strides = array<i32>} : memref<2x2048xf32, #tpu.memory_space<vmem>>, vector<1x256xf32>,
    %c0_30 = arith.constant 0 : index
    %c0_31 = arith.constant 0 : index
    %40 = vector.load %arg6[%c0_30, %c0_31] : memref<2x2048xf32, #tpu.memory_space<vmem>>, vector<2x2048xf32>
    %41 = arith.truncf %40 : vector<2x2048xf32> to vector<2x2048xbf16>
    %c0_32 = arith.constant 0 : index
    %c0_33 = arith.constant 0 : index
    %42 = vector.load %arg3[%c0_32, %c0_33] : memref<2048x128xbf16, #tpu.memory_space<vmem>>, vector<2048x128xbf16>
    %cst_34 = arith.constant dense<0.000000e+00> : vector<2x128xf32>
    %43 = tpu.matmul %41, %42, %cst_34 {dimension_numbers = #tpu.dot_dimension_numbers<[1], [0], [0], [1], [0, 0, 1, 1], [], []>} : vector<2x2048xbf16>, vector<2048x128xbf16>, vector<2x128xf32> -> vector<2x128xf32>
    %c0_35 = arith.constant 0 : index
    %c0_36 = arith.constant 0 : index
    %44 = vector.load %arg4[%c0_35, %c0_36] : memref<1x128xf32, #tpu.memory_space<vmem>>, vector<1x128xf32>
    %45 = vector.broadcast %44 : vector<1x128xf32> to vector<2x128xf32>
    %46 = arith.addf %43, %45 : vector<2x128xf32>
    %47 = tpu.iota {dimensions = array<i32: 1>} : vector<2x128xi32>
    %c6_i32 = arith.constant 6 : i32
    %48 = vector.broadcast %c6_i32 : i32 to vector<2x128xi32>
    %49 = arith.cmpi slt, %47, %48 : vector<2x128xi32>
    %cst_37 = arith.constant -1.000000e+30 : f32
    %50 = vector.broadcast %cst_37 : f32 to vector<2x128xf32>
    %51 = arith.select %49, %46, %50 : vector<2x128xi1>, vector<2x128xf32>
    %cst_38 = arith.constant dense<0xFF800000> : vector<2xf32>
    %52 = vector.multi_reduction <maximumf>, %51, %cst_38 [1] : vector<2x128xf32> to vector<2xf32>
    %53 = vector.shape_cast %52 : vector<2xf32> to vector<2x1xf32>
    %54 = vector.broadcast %53 : vector<2x1xf32> to vector<2x128xf32>
    %55 = arith.subf %51, %54 : vector<2x128xf32>
    %56 = math.exp %55 : vector<2x128xf32>
    %cst_39 = arith.constant 0.000000e+00 : f32
    %57 = vector.broadcast %cst_39 : f32 to vector<2x128xf32>
    %58 = arith.select %49, %56, %57 : vector<2x128xi1>, vector<2x128xf32>
    %cst_40 = arith.constant dense<0.000000e+00> : vector<2xf32>
    %59 = vector.multi_reduction <add>, %58, %cst_40 [1] : vector<2x128xf32> to vector<2xf32>
    %60 = vector.shape_cast %59 : vector<2xf32> to vector<2x1xf32>
    %61 = vector.broadcast %60 : vector<2x1xf32> to vector<2x128xf32>
    %62 = arith.divf %58, %61 : vector<2x128xf32>
    %c6_i32_41 = arith.constant 6 : i32
    %63 = vector.broadcast %c6_i32_41 : i32 to vector<2x128xi32>
    %64 = arith.cmpi eq, %47, %63 : vector<2x128xi32>
    %cst_42 = arith.constant 0.000000e+00 : f32
    %65 = vector.broadcast %cst_42 : f32 to vector<2x128xf32>
    %66 = arith.select %64, %46, %65 : vector<2x128xi1>, vector<2x128xf32>
    %67 = arith.addf %62, %66 : vector<2x128xf32>
    %c0_43 = arith.constant 0 : index
    %c0_44 = arith.constant 0 : index
    %68 = vector.load %arg5[%c0_43, %c0_44] : memref<2x128xf32, #tpu.memory_space<vmem>>, vector<2x128xf32>
    tpu.vector_store %arg5[%c0_43, %c0_44], %67 {strides = array<i32>} : memref<2x128xf32, #tpu.memory_space<vmem>>, vector<2x128xf32>,
    return
  }
}

</mosaic_0001>

<bundles_post_ra>
// kernel: actor_critic_forward.1
= control target key start
LH: loop header
LB: loop body
LE: loop exit
PB: predicated region body
PF: predicated region fallthrough
CT: control target
= control target key end

     0   :  { %v2322_v3 = vmov 0   ;;  %vm100_vm0 = vcmask 392192   ;;  %v166_v44 = vlaneseq  ;;  %vm163_vm1 = vcmask 1040384   ;;  %s2901_s0 = inlined_call_operand.vmem [shape: bf16[48,512], index: 0, kind: input, shape index: {}]   ;;  %s2902_s2 = inlined_call_operand.vmem [shape: f32[8,1], index: 2, kind: input, shape index: {}]   ;;  %s2903_s1 = inlined_call_operand.vmem [shape: bf16[8,48], index: 1, kind: input, shape index: {}]   ;;  %s2904_s3 = inlined_call_operand.vmem [shape: bf16[2048,128], index: 3, kind: input, shape index: {}]   ;;  %s2905_s4 = inlined_call_operand.vmem [shape: f32[1,128], index: 4, kind: input, shape index: {}]   ;;  %s2906_s5 = inlined_call_operand.vmem [shape: f32[2,128], index: 5, kind: output, shape index: {}]  }
   0x1   :  { %v1645_v0 = vld [vmem:[%s2901_s0 + $0x40] sm:$0xf]  ;;  %v2185_v1 = vld [vmem:[%s2901_s0 + $0x4c] sm:$0xf0]  ;;  %v2183_v2 = vld [vmem:[%s2901_s0 + $0x44] sm:$0xf]  ;;  %2316 = vset.pattern.permute.xlu0 %v2322_v3 }
   0x2   :  { %v1646_v4 = vor.u32 %v2185_v1, %v1645_v0  ;;  %v1647_v5 = vld [vmem:[%s2901_s0 + $0x50] sm:$0xf0]  ;;  %v1653_v6 = vld [vmem:[%s2901_s0 + $0x48] sm:$0xf]  ;;  %v2186_v7 = vld [vmem:[%s2901_s0 + $0x54] sm:$0xf0] }
   0x3   :  { %v1650_v8 = vor.u32 %v2183_v2, %v1647_v5  ;;  %v1654_v9 = vor.u32 %v2186_v7, %v1653_v6  ;;  %v2184_v10 = vld [vmem:[%s2901_s0 + $0x4c] sm:$0xf]  ;;  %v1655_v11 = vld [vmem:[%s2901_s0 + $0x58] sm:$0xf0]  ;;  %v1629_v12 = vld [vmem:[%s2901_s0 + $0x20] sm:$0xf] }
   0x4   :  { %109 = vmatpush.bf16.msra.mxu0 %v1646_v4  ;;  %v1658_v13 = vor.u32 %v2184_v10, %v1655_v11  ;;  %v2181_v14 = vld [vmem:[%s2901_s0 + $0x2c] sm:$0xf0]  ;;  %v2179_v15 = vld [vmem:[%s2901_s0 + $0x24] sm:$0xf]  ;;  %v1631_v16 = vld [vmem:[%s2901_s0 + $0x30] sm:$0xf0] }
   0x5   :  { %122 = vmatpush.bf16.msra.mxu1 %v1650_v8  ;;  %135 = vmatpush.bf16.msra.mxu2 %v1654_v9  ;;  %v1630_v17 = vor.u32 %v2181_v14, %v1629_v12  ;;  %v1634_v18 = vor.u32 %v2179_v15, %v1631_v16  ;;  %v1637_v19 = vld [vmem:[%s2901_s0 + $0x28] sm:$0xf]  ;;  %v2182_v20 = vld [vmem:[%s2901_s0 + $0x34] sm:$0xf0]  ;;  %v2180_v21 = vld [vmem:[%s2901_s0 + $0x2c] sm:$0xf] }
   0x6   :  { %148 = vmatpush.bf16.msra.mxu3 %v1658_v13  ;;  %v1638_v22 = vor.u32 %v2182_v20, %v1637_v19  ;;  %v1639_v23 = vld [vmem:[%s2901_s0 + $0x38] sm:$0xf0]  ;;  %v1613_v24 = vld [vmem:[%s2901_s0] sm:$0xf]  ;;  %v2177_v25 = vld [vmem:[%s2901_s0 + $0xc] sm:$0xf0] }
   0x7   :  { %v1642_v26 = vor.u32 %v2180_v21, %v1639_v23  ;;  %v2175_v27 = vld [vmem:[%s2901_s0 + $0x4] sm:$0xf]  ;;  %v1615_v28 = vld [vmem:[%s2901_s0 + $0x10] sm:$0xf0]  ;;  %v1621_v29 = vld [vmem:[%s2901_s0 + $0x8] sm:$0xf]  ;;  %v1614_v30 = vor.u32 %v2177_v25, %v1613_v24 }
   0x8   :  { %110 = vmatpush.bf16.msra.mxu0 %v1630_v17  ;;  %v2178_v31 = vld [vmem:[%s2901_s0 + $0x14] sm:$0xf0]  ;;  %v2176_v32 = vld [vmem:[%s2901_s0 + $0xc] sm:$0xf]  ;;  %v1623_v33 = vld [vmem:[%s2901_s0 + $0x18] sm:$0xf0]  ;;  %v1618_v34 = vor.u32 %v2175_v27, %v1615_v28 }
   0x9   :  { %123 = vmatpush.bf16.msra.mxu1 %v1634_v18  ;;  %136 = vmatpush.bf16.msra.mxu2 %v1638_v22  ;;  %v1622_v35 = vor.u32 %v2178_v31, %v1621_v29  ;;  %v34_v36 = vld [vmem:[%s2902_s2] sm:$0xff]  ;;  %v1626_v37 = vor.u32 %v2176_v32, %v1623_v33  ;;  %vm2438_vm2 = vcmp.lt.s32.totalorder %v166_v44, 256  ;;  %v2194_v3 = vld [vmem:[%s2904_s3 + $0x38] sm:$0xff]  ;;  %v2193_v7 = vld [vmem:[%s2904_s3 + $0x30] sm:$0xff]  ;;  %vm1577_vm5 = vcmask 1041408  }
   0xa   :  { %149 = vmatpush.bf16.msra.mxu3 %v1642_v26  ;;  %37 = vperm.xlu0 %2316, %v34_v36   ;;  %v21_v38 = vld [vmem:[%s2903_s1] sm:$0xf]  ;;  %v2202_v4 = vld [vmem:[%s2904_s3 + $0x78] sm:$0xff]  ;;  %v2201_v8 = vld [vmem:[%s2904_s3 + $0x70] sm:$0xff] }
   0xb   :  { %v2210_v5 = vld [vmem:[%s2904_s3 + $0xb8] sm:$0xff]  ;;  %v2209_v9 = vld [vmem:[%s2904_s3 + $0xb0] sm:$0xff]  ;;  %v2192_v12 = vld [vmem:[%s2904_s3 + $0x28] sm:$0xff] }
   0xc   :  { %111 = vmatpush.bf16.msra.mxu0 %v1614_v30  ;;  %v2218_v6 = vld [vmem:[%s2904_s3 + $0xf8] sm:$0xff]  ;;  %v2217_v10 = vld [vmem:[%s2904_s3 + $0xf0] sm:$0xff]  ;;  %v2200_v13 = vld [vmem:[%s2904_s3 + $0x68] sm:$0xff] }
   0xd   :  { %124 = vmatpush.bf16.msra.mxu1 %v1618_v34  ;;  %137 = vmatpush.bf16.msra.mxu2 %v1622_v35  ;;  %v2208_v14 = vld [vmem:[%s2904_s3 + $0xa8] sm:$0xff]  ;;  %v2191_v16 = vld [vmem:[%s2904_s3 + $0x20] sm:$0xff]  ;;  %v2190_v21 = vld [vmem:[%s2904_s3 + $0x18] sm:$0xff] }
   0xe   :  { %150 = vmatpush.bf16.msra.mxu3 %v1626_v37  ;;  %v2216_v15 = vld [vmem:[%s2904_s3 + $0xe8] sm:$0xff]  ;;  %v2199_v17 = vld [vmem:[%s2904_s3 + $0x60] sm:$0xff]  ;;  %v2198_v22 = vld [vmem:[%s2904_s3 + $0x58] sm:$0xff] }
   0xf   :  { %1659 = vmatmul.msk.bf16.vlgmr.msra.gmra.mxu0 %vm100_vm0, %v21_v38  ;;  %v2207_v18 = vld [vmem:[%s2904_s3 + $0xa0] sm:$0xff]  ;;  %v2206_v23 = vld [vmem:[%s2904_s3 + $0x98] sm:$0xff]  ;;  %v2189_v25 = vld [vmem:[%s2904_s3 + $0x10] sm:$0xff] }
  0x10   :  { %1660 = vmatmul.msk.bf16.vlgmr.msra.gmra.mxu1 %vm100_vm0, %v21_v38  ;;  %1661 = vmatmul.msk.bf16.vlgmr.msra.gmra.mxu2 %vm100_vm0, %v21_v38  ;;  %v2215_v19 = vld [vmem:[%s2904_s3 + $0xe0] sm:$0xff]  ;;  %v2214_v24 = vld [vmem:[%s2904_s3 + $0xd8] sm:$0xff]  ;;  %v2197_v26 = vld [vmem:[%s2904_s3 + $0x50] sm:$0xff] }
  0x11   :  { %1662 = vmatmul.msk.bf16.vlgmr.msra.gmra.mxu3 %vm100_vm0, %v21_v38  ;;  %1365 = vmatpush.bf16.msrb.mxu0 %v2194_v3  ;;  %v2205_v27 = vld [vmem:[%s2904_s3 + $0x90] sm:$0xff]  ;;  %v2188_v29 = vld [vmem:[%s2904_s3 + $0x8] sm:$0xff]  ;;  %v2187_v34 = vld [vmem:[%s2904_s3] sm:$0xff] }
  0x12   :  { %1378 = vmatpush.bf16.msrb.mxu1 %v2202_v4  ;;  %1391 = vmatpush.bf16.msrb.mxu2 %v2210_v5  ;;  %v2213_v28 = vld [vmem:[%s2904_s3 + $0xd0] sm:$0xff]  ;;  %v2196_v30 = vld [vmem:[%s2904_s3 + $0x48] sm:$0xff]  ;;  %v2195_v35 = vld [vmem:[%s2904_s3 + $0x40] sm:$0xff] }
  0x13   :  { %1404 = vmatpush.bf16.msrb.mxu3 %v2218_v6  ;;  %v2204_v31 = vld [vmem:[%s2904_s3 + $0x88] sm:$0xff]  ;;  %v2203_v36 = vld [vmem:[%s2904_s3 + $0x80] sm:$0xff]  ;;  %v2226_v38 = vld [vmem:[%s2904_s3 + $0x138] sm:$0xff] }
  0x14   :  { %v2212_v33 = vld [vmem:[%s2904_s3 + $0xc8] sm:$0xff]  ;;  %v2211_v37 = vld [vmem:[%s2904_s3 + $0xc0] sm:$0xff]  ;;  %v2229_v3 = vld [vmem:[%s2904_s3 + $0x150] sm:$0xff] }
  0x15   :  { %1366 = vmatpush.bf16.msrb.mxu0 %v2193_v7  ;;  %v2237_v4 = vld [vmem:[%s2904_s3 + $0x190] sm:$0xff]  ;;  %v2220_v6 = vld [vmem:[%s2904_s3 + $0x108] sm:$0xff]  ;;  %v2282_v48 = vld [vmem:[%s2904_s3 + $0x2f8] sm:$0xff] }
  0x16   :  { %1379 = vmatpush.bf16.msrb.mxu1 %v2201_v8  ;;  %1392 = vmatpush.bf16.msrb.mxu2 %v2209_v9  ;;  %v2245_v5 = vld [vmem:[%s2904_s3 + $0x1d0] sm:$0xff]  ;;  %v2228_v7 = vld [vmem:[%s2904_s3 + $0x148] sm:$0xff] }
  0x17   :  { %1405 = vmatpush.bf16.msrb.mxu3 %v2217_v10  ;;  %v2236_v8 = vld [vmem:[%s2904_s3 + $0x188] sm:$0xff] }
  0x18   :  { %v2244_v9 = vld [vmem:[%s2904_s3 + $0x1c8] sm:$0xff] }
  0x19   :  { %1367 = vmatpush.bf16.msrb.mxu0 %v2192_v12  ;;  %v2227_v12 = vld [vmem:[%s2904_s3 + $0x140] sm:$0xff] }
  0x1a   :  { %1380 = vmatpush.bf16.msrb.mxu1 %v2200_v13  ;;  %1393 = vmatpush.bf16.msrb.mxu2 %v2208_v14  ;;  %v2235_v13 = vld [vmem:[%s2904_s3 + $0x180] sm:$0xff] }
  0x1b   :  { %1406 = vmatpush.bf16.msrb.mxu3 %v2216_v15  ;;  %v2243_v14 = vld [vmem:[%s2904_s3 + $0x1c0] sm:$0xff] }
  0x1d   :  { %1368 = vmatpush.bf16.msrb.mxu0 %v2191_v16 }
  0x1e   :  { %1381 = vmatpush.bf16.msrb.mxu1 %v2199_v17  ;;  %1394 = vmatpush.bf16.msrb.mxu2 %v2207_v18 }
  0x1f   :  { %1407 = vmatpush.bf16.msrb.mxu3 %v2215_v19 }
  0x21   :  { %1369 = vmatpush.bf16.msrb.mxu0 %v2190_v21 }
  0x22   :  { %1382 = vmatpush.bf16.msrb.mxu1 %v2198_v22  ;;  %1395 = vmatpush.bf16.msrb.mxu2 %v2206_v23 }
  0x23   :  { %1408 = vmatpush.bf16.msrb.mxu3 %v2214_v24 }
  0x25   :  { %1370 = vmatpush.bf16.msrb.mxu0 %v2189_v25 }
  0x26   :  { %1383 = vmatpush.bf16.msrb.mxu1 %v2197_v26  ;;  %1396 = vmatpush.bf16.msrb.mxu2 %v2205_v27 }
  0x27   :  { %1409 = vmatpush.bf16.msrb.mxu3 %v2213_v28 }
  0x29   :  { %1371 = vmatpush.bf16.msrb.mxu0 %v2188_v29 }
  0x2a   :  { %1384 = vmatpush.bf16.msrb.mxu1 %v2196_v30  ;;  %1397 = vmatpush.bf16.msrb.mxu2 %v2204_v31 }
  0x2b   :  { %1410 = vmatpush.bf16.msrb.mxu3 %v2212_v33  ;;  %v2257_v33 = vld [vmem:[%s2904_s3 + $0x230] sm:$0xff] }
  0x2d   :  { %1372 = vmatpush.bf16.msrb.mxu0 %v2187_v34  ;;  %v2265_v34 = vld [vmem:[%s2904_s3 + $0x270] sm:$0xff] }
  0x2e   :  { %1385 = vmatpush.bf16.msrb.mxu1 %v2195_v35  ;;  %1398 = vmatpush.bf16.msrb.mxu2 %v2203_v36  ;;  %v2273_v35 = vld [vmem:[%s2904_s3 + $0x2b0] sm:$0xff] }
  0x2f   :  { %1411 = vmatpush.bf16.msrb.mxu3 %v2211_v37  ;;  %v2281_v36 = vld [vmem:[%s2904_s3 + $0x2f0] sm:$0xff]  ;;  %v2256_v37 = vld [vmem:[%s2904_s3 + $0x228] sm:$0xff] }
  0x31   :  { %1417 = vmatpush.bf16.msra.mxu0 %v2226_v38  ;;  %v2264_v38 = vld [vmem:[%s2904_s3 + $0x268] sm:$0xff] }
  0x7c   :  { %v38_v39 = vpop.permute.xlu0 %37 }
  0x8c   :  { %v113_v40 = vpop.f32.mrf.mxu0 }
  0x8d   :  { %v114_v41 = vadd.f32 %v113_v40, %v38_v39  ;;  %v126_v42 = vpop.f32.mrf.mxu1  ;;  %v2242_v40 = vld [vmem:[%s2904_s3 + $0x1b8] sm:$0xff] }
  0x8e   :  { %v127_v43 = vadd.f32 %v126_v42, %v38_v39  ;;  %v2225_v42 = vld [vmem:[%s2904_s3 + $0x130] sm:$0xff]  ;;  %1443 = vmatpush.bf16.msra.mxu2 %v2242_v40  ;;  %v2280_v40 = vld [vmem:[%s2904_s3 + $0x2e8] sm:$0xff] }
  0x8f   :  { %v2431_v45 = vmax.f32 %v114_v41, 0.0  ;;  %v2250_v41 = vld [vmem:[%s2904_s3 + $0x1f8] sm:$0xff]  ;;  %1418 = vmatpush.bf16.msra.mxu0 %v2225_v42  ;;  %v2263_v42 = vld [vmem:[%s2904_s3 + $0x260] sm:$0xff] }
  0x90   :  { %v2433_v46 = vmax.f32 %v127_v43, 0.0  ;;  %v2233_v43 = vld [vmem:[%s2904_s3 + $0x170] sm:$0xff]  ;;  %1456 = vmatpush.bf16.msra.mxu3 %v2250_v41  ;;  %v2255_v41 = vld [vmem:[%s2904_s3 + $0x220] sm:$0xff] }
  0x91   :  { %178 = vst [vmem:[#allocation1] sm:$0xff] %v2431_v45 }
  0x92   :  { %v162_v47 = vrot.slane %v2433_v46, 7  ;;  %179 = vst [vmem:[#allocation1 + $0x9] sm:$0xff] %v2433_v46 }
  0x93   :  { %v139_v49 = vpop.f32.mrf.mxu2 }
  0x94   :  { %v164_v50 = vsel %vm163_vm1, %v2431_v45, %v162_v47  ;;  %v152_v51 = vpop.f32.mrf.mxu3  ;;  %v115_v52 = vpop.f32.mrf.mxu0  ;;  %v140_v53 = vadd.f32 %v139_v49, %v38_v39  ;;  %v2241_v47 = vld [vmem:[%s2904_s3 + $0x1b0] sm:$0xff] }
  0x95   :  { %170 = vst.msk [vmem:[#allocation2] ss:$2 sm:$0x3] %vm2438_vm2, %v164_v50  ;;  %v153_v54 = vadd.f32 %v152_v51, %v38_v39  ;;  %v128_v55 = vpop.f32.mrf.mxu1  ;;  %v2234_v39 = vld [vmem:[%s2904_s3 + $0x178] sm:$0xff]  ;;  %v2249_v49 = vld [vmem:[%s2904_s3 + $0x1f0] sm:$0xff]  ;;  %v2224_v51 = vld [vmem:[%s2904_s3 + $0x128] sm:$0xff]  ;;  %1444 = vmatpush.bf16.msra.mxu2 %v2241_v47 }
  0x96   :  { %v2449_v58 = vmax.f32 %v140_v53, 0.0  ;;  %1430 = vmatpush.bf16.msra.mxu1 %v2234_v39  ;;  %v2232_v52 = vld [vmem:[%s2904_s3 + $0x168] sm:$0xff]  ;;  %1457 = vmatpush.bf16.msra.mxu3 %v2249_v49  ;;  %v2223_v55 = vld [vmem:[%s2904_s3 + $0x120] sm:$0xff] }
  0x97   :  { %v2447_v56 = vmax.f32 %v153_v54, 0.0  ;;  %v2240_v53 = vld [vmem:[%s2904_s3 + $0x1a8] sm:$0xff]  ;;  %1419 = vmatpush.bf16.msra.mxu0 %v2224_v51  ;;  %v2279_v47 = vld [vmem:[%s2904_s3 + $0x2e0] sm:$0xff]  ;;  %v2254_v51 = vld [vmem:[%s2904_s3 + $0x218] sm:$0xff] }
  0x98   :  { %v2248_v54 = vld [vmem:[%s2904_s3 + $0x1e8] sm:$0xff] }
  0x99   :  { %v181_v57 = vld [vmem:[#allocation1 + $0x1] ss:$9 sm:$0xff]  ;;  %v173_v59 = vrot.slane %v2447_v56, 7  ;;  %1445 = vmatpush.bf16.msra.mxu2 %v2240_v53 }
  0x9a   :  { %184 = vst.msk [vmem:[#allocation2 + $0x4] ss:$2 sm:$0x3] %vm2438_vm2, %v181_v57  ;;  %1431 = vmatpush.bf16.msra.mxu1 %v2233_v43  ;;  %v2231_v57 = vld [vmem:[%s2904_s3 + $0x160] sm:$0xff]  ;;  %1458 = vmatpush.bf16.msra.mxu3 %v2248_v54  ;;  %v2272_v39 = vld [vmem:[%s2904_s3 + $0x2a8] sm:$0xff] }
  0x9b   :  { %185 = vst [vmem:[#allocation1] sm:$0xff] %v2449_v58  ;;  %v174_v60 = vsel %vm163_vm1, %v2449_v58, %v173_v59  ;;  %v141_v61 = vpop.f32.mrf.mxu2  ;;  %v2239_v59 = vld [vmem:[%s2904_s3 + $0x1a0] sm:$0xff]  ;;  %1420 = vmatpush.bf16.msra.mxu0 %v2223_v55  ;;  %v2270_v55 = vld [vmem:[%s2904_s3 + $0x298] sm:$0xff] }
  0x9c   :  { %177 = vst.msk [vmem:[#allocation2 + $0x1] ss:$2 sm:$0x3] %vm2438_vm2, %v174_v60  ;;  %v154_v62 = vpop.f32.mrf.mxu3  ;;  %v2247_v60 = vld [vmem:[%s2904_s3 + $0x1e0] sm:$0xff]  ;;  %v2222_v61 = vld [vmem:[%s2904_s3 + $0x118] sm:$0xff] }
  0x9d   :  { %186 = vst [vmem:[#allocation1 + $0x9] sm:$0xff] %v2447_v56  ;;  %v2230_v62 = vld [vmem:[%s2904_s3 + $0x158] sm:$0xff]  ;;  %1446 = vmatpush.bf16.msra.mxu2 %v2239_v59  ;;  %v2271_v43 = vld [vmem:[%s2904_s3 + $0x2a0] sm:$0xff]  ;;  %v2253_v59 = vld [vmem:[%s2904_s3 + $0x210] sm:$0xff] }
  0x9e   :  { %1432 = vmatpush.bf16.msra.mxu1 %v2232_v52  ;;  %1459 = vmatpush.bf16.msra.mxu3 %v2247_v60  ;;  %v2262_v52 = vld [vmem:[%s2904_s3 + $0x258] sm:$0xff]  ;;  %v2261_v60 = vld [vmem:[%s2904_s3 + $0x250] sm:$0xff] }
  0x9f   :  { %1421 = vmatpush.bf16.msra.mxu0 %v2222_v61  ;;  %v2269_v61 = vld [vmem:[%s2904_s3 + $0x290] sm:$0xff] }
  0xa2   :  { %1433 = vmatpush.bf16.msra.mxu1 %v2231_v57  ;;  %v2278_v57 = vld [vmem:[%s2904_s3 + $0x2d8] sm:$0xff] }
  0xa4   :  { %v188_v63 = vld [vmem:[#allocation1 + $0x1] ss:$9 sm:$0xff] }
  0xa5   :  { %191 = vst.msk [vmem:[#allocation2 + $0x5] ss:$2 sm:$0x3] %vm2438_vm2, %v188_v63 }
  0xa6   :  { %192 = vst [vmem:[#allocation1] sm:$0xff] %v2431_v45  ;;  %1434 = vmatpush.bf16.msra.mxu1 %v2230_v62  ;;  %v2277_v62 = vld [vmem:[%s2904_s3 + $0x2d0] sm:$0xff] }
  0xa7   :  { %193 = vst [vmem:[#allocation1 + $0x9] sm:$0xff] %v2433_v46 }
  0xaa   :  { %1435 = vmatpush.bf16.msra.mxu1 %v2229_v3  ;;  %v2251_v3 = vld [vmem:[%s2904_s3 + $0x200] sm:$0xff] }
  0xac   :  { %v276_v18 = vld [vmem:[#allocation2] sm:$0xff] }
  0xae   :  { %v195_v0 = vld [vmem:[#allocation1 + $0x2] ss:$9 sm:$0xff]  ;;  %1436 = vmatpush.bf16.msra.mxu1 %v2228_v7 }
  0xaf   :  { %199 = vst [vmem:[#allocation1] sm:$0xff] %v2449_v58  ;;  %v2290_v7 = vld [vmem:[%s2904_s3 + $0x338] sm:$0xff] }
  0xb0   :  { %200 = vst [vmem:[#allocation1 + $0x9] sm:$0xff] %v2447_v56 }
  0xb1   :  { %198 = vst.msk [vmem:[#allocation2 + $0x8] ss:$2 sm:$0x3] %vm2438_vm2, %v195_v0  ;;  %v2238_v0 = vld [vmem:[%s2904_s3 + $0x198] sm:$0xff] }
  0xb2   :  { %1447 = vmatpush.bf16.msra.mxu2 %v2238_v0  ;;  %1437 = vmatpush.bf16.msra.mxu1 %v2227_v12  ;;  %v2260_v0 = vld [vmem:[%s2904_s3 + $0x248] sm:$0xff] }
  0xb6   :  { %1448 = vmatpush.bf16.msra.mxu2 %v2237_v4  ;;  %v2259_v4 = vld [vmem:[%s2904_s3 + $0x240] sm:$0xff] }
  0xb7   :  { %v202_v1 = vld [vmem:[#allocation1 + $0x2] ss:$9 sm:$0xff] }
  0xb8   :  { %206 = vst [vmem:[#allocation1] sm:$0xff] %v2431_v45 }
  0xb9   :  { %207 = vst [vmem:[#allocation1 + $0x9] sm:$0xff] %v2433_v46 }
  0xba   :  { %205 = vst.msk [vmem:[#allocation2 + $0x9] ss:$2 sm:$0x3] %vm2438_vm2, %v202_v1  ;;  %v2246_v1 = vld [vmem:[%s2904_s3 + $0x1d8] sm:$0xff]  ;;  %1449 = vmatpush.bf16.msra.mxu2 %v2236_v8 }
  0xbb   :  { %1460 = vmatpush.bf16.msra.mxu3 %v2246_v1  ;;  %v2268_v1 = vld [vmem:[%s2904_s3 + $0x288] sm:$0xff]  ;;  %v2298_v8 = vld [vmem:[%s2904_s3 + $0x378] sm:$0xff] }
  0xbe   :  { %1450 = vmatpush.bf16.msra.mxu2 %v2235_v13 }
  0xbf   :  { %1461 = vmatpush.bf16.msra.mxu3 %v2245_v5  ;;  %v2267_v5 = vld [vmem:[%s2904_s3 + $0x280] sm:$0xff] }
  0xc0   :  { %v209_v2 = vld [vmem:[#allocation1 + $0x3] ss:$9 sm:$0xff] }
  0xc1   :  { %213 = vst [vmem:[#allocation1] sm:$0xff] %v2449_v58 }
  0xc2   :  { %214 = vst [vmem:[#allocation1 + $0x9] sm:$0xff] %v2447_v56 }
  0xc3   :  { %212 = vst.msk [vmem:[#allocation2 + $0xc] ss:$2 sm:$0x3] %vm2438_vm2, %v209_v2  ;;  %v2221_v2 = vld [vmem:[%s2904_s3 + $0x110] sm:$0xff]  ;;  %1462 = vmatpush.bf16.msra.mxu3 %v2244_v9  ;;  %v2306_v9 = vld [vmem:[%s2904_s3 + $0x3b8] sm:$0xff] }
  0xc4   :  { %1422 = vmatpush.bf16.msra.mxu0 %v2221_v2  ;;  %v2276_v2 = vld [vmem:[%s2904_s3 + $0x2c8] sm:$0xff] }
  0xc7   :  { %1463 = vmatpush.bf16.msra.mxu3 %v2243_v14 }
  0xc8   :  { %1423 = vmatpush.bf16.msra.mxu0 %v2220_v6  ;;  %v2275_v6 = vld [vmem:[%s2904_s3 + $0x2c0] sm:$0xff] }
  0xc9   :  { %v216_v11 = vld [vmem:[#allocation1 + $0x3] ss:$9 sm:$0xff] }
  0xca   :  { %220 = vst [vmem:[#allocation1] sm:$0xff] %v2431_v45 }
  0xcb   :  { %221 = vst [vmem:[#allocation1 + $0x9] sm:$0xff] %v2433_v46 }
  0xcc   :  { %219 = vst.msk [vmem:[#allocation2 + $0xd] ss:$2 sm:$0x3] %vm2438_vm2, %v216_v11  ;;  %v2219_v11 = vld [vmem:[%s2904_s3 + $0x100] sm:$0xff] }
  0xcd   :  { %1424 = vmatpush.bf16.msra.mxu0 %v2219_v11 }
  0xd2   :  { %v223_v20 = vld [vmem:[#allocation1 + $0x4] ss:$9 sm:$0xff] }
  0xd3   :  { %227 = vst [vmem:[#allocation1] sm:$0xff] %v2449_v58  ;;  %v277_v19 = vld [vmem:[#allocation2 + $0x8] sm:$0xff] }
  0xd4   :  { %228 = vst [vmem:[#allocation1 + $0x9] sm:$0xff] %v2447_v56 }
  0xd5   :  { %226 = vst.msk [vmem:[#allocation2 + $0x10] ss:$2 sm:$0x3] %vm2438_vm2, %v223_v20 }
  0xdb   :  { %v230_v32 = vld [vmem:[#allocation1 + $0x4] ss:$9 sm:$0xff] }
  0xdc   :  { %233 = vst.msk [vmem:[#allocation2 + $0x11] ss:$2 sm:$0x3] %vm2438_vm2, %v230_v32 }
  0xdd   :  { %234 = vst [vmem:[#allocation1] sm:$0xff] %v2431_v45 }
  0xde   :  { %235 = vst [vmem:[#allocation1 + $0x9] sm:$0xff] %v2433_v46 }
  0xe5   :  { %v237_v50 = vld [vmem:[#allocation1 + $0x5] ss:$9 sm:$0xff] }
  0xe6   :  { %240 = vst.msk [vmem:[#allocation2 + $0x14] ss:$2 sm:$0x3] %vm2438_vm2, %v237_v50 }
  0xe7   :  { %241 = vst [vmem:[#allocation1] sm:$0xff] %v2449_v58 }
  0xe8   :  { %242 = vst [vmem:[#allocation1 + $0x9] sm:$0xff] %v2447_v56 }
  0xef   :  { %v244_v63 = vld [vmem:[#allocation1 + $0x5] ss:$9 sm:$0xff] }
  0xf0   :  { %247 = vst.msk [vmem:[#allocation2 + $0x15] ss:$2 sm:$0x3] %vm2438_vm2, %v244_v63  ;;  %v2252_v63 = vld [vmem:[%s2904_s3 + $0x208] sm:$0xff] }
  0xf1   :  { %248 = vst [vmem:[#allocation1] sm:$0xff] %v2431_v45 }
  0xf2   :  { %249 = vst [vmem:[#allocation1 + $0x9] sm:$0xff] %v2433_v46 }
  0xf7   :  { %v278_v32 = vld [vmem:[#allocation2 + $0x10] sm:$0xff] }
  0xf9   :  { %v251_v10 = vld [vmem:[#allocation1 + $0x6] ss:$9 sm:$0xff] }
  0xfa   :  { %256 = vst [vmem:[#allocation1 + $0x9] sm:$0xff] %v2447_v56 }
  0xfb   :  { %254 = vst.msk [vmem:[#allocation2 + $0x18] ss:$2 sm:$0x3] %vm2438_vm2, %v251_v10  ;;  %v2314_v10 = vld [vmem:[%s2904_s3 + $0x3f8] sm:$0xff] }
  0xfc   :  { %255 = vst [vmem:[#allocation1] sm:$0xff] %v2449_v58 }
 0x103   :  { %v258_v15 = vld [vmem:[#allocation1 + $0x6] ss:$9 sm:$0xff] }
 0x104   :  { %261 = vst.msk [vmem:[#allocation2 + $0x19] ss:$2 sm:$0x3] %vm2438_vm2, %v258_v15 }
 0x105   :  { %262 = vst [vmem:[#allocation1] sm:$0xff] %v2431_v45  ;;  %v2258_v45 = vld [vmem:[%s2904_s3 + $0x238] sm:$0xff] }
 0x106   :  { %263 = vst [vmem:[#allocation1 + $0x9] sm:$0xff] %v2433_v46  ;;  %v2266_v46 = vld [vmem:[%s2904_s3 + $0x278] sm:$0xff] }
 0x10d   :  { %v265_v16 = vld [vmem:[#allocation1 + $0x7] ss:$9 sm:$0xff] }
 0x10e   :  { %268 = vst.msk [vmem:[#allocation2 + $0x1c] ss:$2 sm:$0x3] %vm2438_vm2, %v265_v16 }
 0x10f   :  { %269 = vst [vmem:[#allocation1] sm:$0xff] %v2449_v58 }
 0x110   :  { %270 = vst [vmem:[#allocation1 + $0x9] sm:$0xff] %v2447_v56  ;;  %v2274_v56 = vld [vmem:[%s2904_s3 + $0x2b8] sm:$0xff] }
 0x117   :  { %v272_v17 = vld [vmem:[#allocation1 + $0x7] ss:$9 sm:$0xff] }
 0x118   :  { %275 = vst.msk [vmem:[#allocation2 + $0x1d] ss:$2 sm:$0x3] %vm2438_vm2, %v272_v17  ;;  %v2289_v17 = vld [vmem:[%s2904_s3 + $0x330] sm:$0xff] }
 0x119   :  { %284 = vst [vmem:[#allocation1] ss:$4 sm:$0xff] %v276_v18  ;;  %v2297_v18 = vld [vmem:[%s2904_s3 + $0x370] sm:$0xff] }
 0x11a   :  { %286 = vst [vmem:[#allocation1 + $0x20] ss:$4 sm:$0xff] %v277_v19 }
 0x11f   :  { %v279_v20 = vld [vmem:[#allocation2 + $0x18] sm:$0xff] }
 0x120   :  { %v287_v58 = vld.sshfl [vmem:[#allocation1] sm:$0xff pattern:$0x73625140]  ;;  %v288_v21 = vld.sshfl [vmem:[#allocation1 + $0x8] sm:$0xff pattern:$0x73625140] }
 0x121   :  { %v321_v22 = vpack.c.bf16 %v287_v58, %v287_v58  ;;  %v322_v23 = vpack.c.bf16 %v288_v21, %v288_v21  ;;  %v289_v24 = vld.sshfl [vmem:[#allocation1 + $0x10] sm:$0xff pattern:$0x73625140]  ;;  %v290_v25 = vld.sshfl [vmem:[#allocation1 + $0x18] sm:$0xff pattern:$0x73625140] }
 0x122   :  { %v323_v26 = vpack.c.bf16 %v289_v24, %v289_v24  ;;  %v324_v27 = vpack.c.bf16 %v290_v25, %v290_v25  ;;  %v291_v28 = vld.sshfl [vmem:[#allocation1 + $0x20] sm:$0xff pattern:$0x73625140]  ;;  %v292_v29 = vld.sshfl [vmem:[#allocation1 + $0x28] sm:$0xff pattern:$0x73625140] }
 0x123   :  { %1373 = vmatmul.bf16.vlgmr.msrb.gmra.mxu0 %v321_v22  ;;  %1386 = vmatmul.bf16.vlgmr.msrb.gmra.mxu1 %v322_v23  ;;  %v293_v30 = vld.sshfl [vmem:[#allocation1 + $0x30] sm:$0xff pattern:$0x73625140]  ;;  %v294_v31 = vld.sshfl [vmem:[#allocation1 + $0x38] sm:$0xff pattern:$0x73625140]  ;;  %v325_v49 = vpack.c.bf16 %v291_v28, %v291_v28  ;;  %v326_v50 = vpack.c.bf16 %v292_v29, %v292_v29 }
 0x124   :  { %1399 = vmatmul.bf16.vlgmr.msrb.gmra.mxu2 %v323_v26  ;;  %1412 = vmatmul.bf16.vlgmr.msrb.gmra.mxu3 %v324_v27  ;;  %296 = vst [vmem:[#allocation1 + $0x20] ss:$4 sm:$0xff] %v279_v20  ;;  %v327_v53 = vpack.c.bf16 %v293_v30, %v293_v30  ;;  %v328_v54 = vpack.c.bf16 %v294_v31, %v294_v31  ;;  %v2288_v58 = vld [vmem:[%s2904_s3 + $0x328] sm:$0xff]  ;;  %v2287_v22 = vld [vmem:[%s2904_s3 + $0x320] sm:$0xff]  ;;  %v2286_v26 = vld [vmem:[%s2904_s3 + $0x318] sm:$0xff] }
 0x125   :  { %1469 = vmatpush.bf16.msrb.mxu0 %v2258_v45  ;;  %1482 = vmatpush.bf16.msrb.mxu1 %v2266_v46  ;;  %295 = vst [vmem:[#allocation1] ss:$4 sm:$0xff] %v278_v32  ;;  %v2305_v45 = vld [vmem:[%s2904_s3 + $0x3b0] sm:$0xff]  ;;  %v2296_v21 = vld [vmem:[%s2904_s3 + $0x368] sm:$0xff]  ;;  %v2295_v23 = vld [vmem:[%s2904_s3 + $0x360] sm:$0xff] }
 0x126   :  { %1495 = vmatpush.bf16.msrb.mxu2 %v2274_v56  ;;  %1508 = vmatpush.bf16.msrb.mxu3 %v2282_v48  ;;  %v2313_v46 = vld [vmem:[%s2904_s3 + $0x3f0] sm:$0xff]  ;;  %v2304_v56 = vld [vmem:[%s2904_s3 + $0x3a8] sm:$0xff]  ;;  %v2303_v24 = vld [vmem:[%s2904_s3 + $0x3a0] sm:$0xff] }
 0x127   :  { %v2312_v48 = vld [vmem:[%s2904_s3 + $0x3e8] sm:$0xff]  ;;  %v2311_v25 = vld [vmem:[%s2904_s3 + $0x3e0] sm:$0xff]  ;;  %v2294_v27 = vld [vmem:[%s2904_s3 + $0x358] sm:$0xff] }
 0x128   :  { %v2302_v28 = vld [vmem:[%s2904_s3 + $0x398] sm:$0xff]  ;;  %v2285_v30 = vld [vmem:[%s2904_s3 + $0x310] sm:$0xff] }
 0x129   :  { %1470 = vmatpush.bf16.msrb.mxu0 %v2257_v33  ;;  %1483 = vmatpush.bf16.msrb.mxu1 %v2265_v34  ;;  %v2310_v29 = vld [vmem:[%s2904_s3 + $0x3d8] sm:$0xff]  ;;  %v2293_v31 = vld [vmem:[%s2904_s3 + $0x350] sm:$0xff]  ;;  %v2284_v34 = vld [vmem:[%s2904_s3 + $0x308] sm:$0xff] }
 0x12a   :  { %1496 = vmatpush.bf16.msrb.mxu2 %v2273_v35  ;;  %1509 = vmatpush.bf16.msrb.mxu3 %v2281_v36  ;;  %v2301_v32 = vld [vmem:[%s2904_s3 + $0x390] sm:$0xff]  ;;  %v2292_v35 = vld [vmem:[%s2904_s3 + $0x348] sm:$0xff] }
 0x12b   :  { %v2309_v33 = vld [vmem:[%s2904_s3 + $0x3d0] sm:$0xff]  ;;  %v2300_v36 = vld [vmem:[%s2904_s3 + $0x388] sm:$0xff] }
 0x12c   :  { %v297_v11 = vld.sshfl [vmem:[#allocation1] sm:$0xff pattern:$0x73625140]  ;;  %v298_v12 = vld.sshfl [vmem:[#allocation1 + $0x8] sm:$0xff pattern:$0x73625140] }
 0x12d   :  { %1471 = vmatpush.bf16.msrb.mxu0 %v2256_v37  ;;  %1484 = vmatpush.bf16.msrb.mxu1 %v2264_v38  ;;  %v299_v13 = vld.sshfl [vmem:[#allocation1 + $0x10] sm:$0xff pattern:$0x73625140]  ;;  %v300_v14 = vld.sshfl [vmem:[#allocation1 + $0x18] sm:$0xff pattern:$0x73625140]  ;;  %v329_v15 = vpack.c.bf16 %v297_v11, %v297_v11  ;;  %v330_v16 = vpack.c.bf16 %v298_v12, %v298_v12 }
 0x12e   :  { %1497 = vmatpush.bf16.msrb.mxu2 %v2272_v39  ;;  %1510 = vmatpush.bf16.msrb.mxu3 %v2280_v40  ;;  %v331_v19 = vpack.c.bf16 %v299_v13, %v299_v13  ;;  %v332_v20 = vpack.c.bf16 %v300_v14, %v300_v14  ;;  %v2308_v37 = vld [vmem:[%s2904_s3 + $0x3c8] sm:$0xff]  ;;  %v2283_v38 = vld [vmem:[%s2904_s3 + $0x300] sm:$0xff] }
 0x12f   :  { %v2291_v39 = vld [vmem:[%s2904_s3 + $0x340] sm:$0xff] }
 0x130   :  { %v2299_v40 = vld [vmem:[%s2904_s3 + $0x380] sm:$0xff] }
 0x131   :  { %1472 = vmatpush.bf16.msrb.mxu0 %v2255_v41  ;;  %1485 = vmatpush.bf16.msrb.mxu1 %v2263_v42  ;;  %v2307_v41 = vld [vmem:[%s2904_s3 + $0x3c0] sm:$0xff] }
 0x132   :  { %1498 = vmatpush.bf16.msrb.mxu2 %v2271_v43  ;;  %1511 = vmatpush.bf16.msrb.mxu3 %v2279_v47  ;;  %v301_v42 = vld.sshfl [vmem:[#allocation1 + $0x20] sm:$0xff pattern:$0x73625140]  ;;  %v302_v43 = vld.sshfl [vmem:[#allocation1 + $0x28] sm:$0xff pattern:$0x73625140] }
 0x133   :  { %1425 = vmatmul.bf16.vlgmr.msra.gmra.mxu0 %v325_v49  ;;  %1438 = vmatmul.bf16.vlgmr.msra.gmra.mxu1 %v326_v50  ;;  %v303_v47 = vld.sshfl [vmem:[#allocation1 + $0x30] sm:$0xff pattern:$0x73625140]  ;;  %v304_v49 = vld.sshfl [vmem:[#allocation1 + $0x38] sm:$0xff pattern:$0x73625140]  ;;  %v333_v50 = vpack.c.bf16 %v301_v42, %v301_v42 }
 0x134   :  { %1451 = vmatmul.bf16.vlgmr.msra.gmra.mxu2 %v327_v53  ;;  %1464 = vmatmul.bf16.vlgmr.msra.gmra.mxu3 %v328_v54  ;;  %v336_v53 = vpack.c.bf16 %v304_v49, %v304_v49 }
 0x135   :  { %1473 = vmatpush.bf16.msrb.mxu0 %v2254_v51  ;;  %1486 = vmatpush.bf16.msrb.mxu1 %v2262_v52  ;;  %v334_v51 = vpack.c.bf16 %v302_v43, %v302_v43  ;;  %v335_v52 = vpack.c.bf16 %v303_v47, %v303_v47 }
 0x136   :  { %1499 = vmatpush.bf16.msrb.mxu2 %v2270_v55  ;;  %1512 = vmatpush.bf16.msrb.mxu3 %v2278_v57 }
 0x139   :  { %1474 = vmatpush.bf16.msrb.mxu0 %v2253_v59  ;;  %1487 = vmatpush.bf16.msrb.mxu1 %v2261_v60 }
 0x13a   :  { %1500 = vmatpush.bf16.msrb.mxu2 %v2269_v61  ;;  %1513 = vmatpush.bf16.msrb.mxu3 %v2277_v62 }
 0x13d   :  { %1475 = vmatpush.bf16.msrb.mxu0 %v2252_v63  ;;  %1488 = vmatpush.bf16.msrb.mxu1 %v2260_v0 }
 0x13e   :  { %1501 = vmatpush.bf16.msrb.mxu2 %v2268_v1  ;;  %1514 = vmatpush.bf16.msrb.mxu3 %v2276_v2 }
 0x141   :  { %1476 = vmatpush.bf16.msrb.mxu0 %v2251_v3  ;;  %1489 = vmatpush.bf16.msrb.mxu1 %v2259_v4 }
 0x142   :  { %1502 = vmatpush.bf16.msrb.mxu2 %v2267_v5  ;;  %1515 = vmatpush.bf16.msrb.mxu3 %v2275_v6  ;;  %v2317_v6 = vld [vmem:[%s2905_s4] ss:$0 sm:$0xff] }
 0x144   :  { %1477 = vmatmul.bf16.vlgmr.msrb.gmra.mxu0 %v329_v15  ;;  %1490 = vmatmul.bf16.vlgmr.msrb.gmra.mxu1 %v330_v16 }
 0x145   :  { %1521 = vmatpush.bf16.msra.mxu0 %v2290_v7  ;;  %1534 = vmatpush.bf16.msra.mxu1 %v2298_v8 }
 0x146   :  { %1547 = vmatpush.bf16.msra.mxu2 %v2306_v9  ;;  %1560 = vmatpush.bf16.msra.mxu3 %v2314_v10 }
 0x147   :  { %1503 = vmatmul.bf16.vlgmr.msrb.gmra.mxu2 %v331_v19  ;;  %1516 = vmatmul.bf16.vlgmr.msrb.gmra.mxu3 %v332_v20 }
 0x149   :  { %1522 = vmatpush.bf16.msra.mxu0 %v2289_v17  ;;  %1535 = vmatpush.bf16.msra.mxu1 %v2297_v18 }
 0x14a   :  { %1548 = vmatpush.bf16.msra.mxu2 %v2305_v45  ;;  %1561 = vmatpush.bf16.msra.mxu3 %v2313_v46 }
 0x14d   :  { %1523 = vmatpush.bf16.msra.mxu0 %v2288_v58  ;;  %1536 = vmatpush.bf16.msra.mxu1 %v2296_v21 }
 0x14e   :  { %1549 = vmatpush.bf16.msra.mxu2 %v2304_v56  ;;  %1562 = vmatpush.bf16.msra.mxu3 %v2312_v48 }
 0x151   :  { %1524 = vmatpush.bf16.msra.mxu0 %v2287_v22  ;;  %1537 = vmatpush.bf16.msra.mxu1 %v2295_v23 }
 0x152   :  { %1550 = vmatpush.bf16.msra.mxu2 %v2303_v24  ;;  %1563 = vmatpush.bf16.msra.mxu3 %v2311_v25 }
 0x155   :  { %1525 = vmatpush.bf16.msra.mxu0 %v2286_v26  ;;  %1538 = vmatpush.bf16.msra.mxu1 %v2294_v27  ;;  %v1574_v27 = vand.u32 127, %v166_v44 }
 0x156   :  { %1551 = vmatpush.bf16.msra.mxu2 %v2302_v28  ;;  %1564 = vmatpush.bf16.msra.mxu3 %v2310_v29 }
 0x157   :  { %vm1603_vm3 = vcmp.eq.s32.totalorder %v1574_v27, 6  ;;  %vm1575_vm4 = vcmp.lt.s32.totalorder %v1574_v27, 6 }
 0x159   :  { %1526 = vmatpush.bf16.msra.mxu0 %v2285_v30  ;;  %1539 = vmatpush.bf16.msra.mxu1 %v2293_v31 }
 0x15a   :  { %1552 = vmatpush.bf16.msra.mxu2 %v2301_v32  ;;  %1565 = vmatpush.bf16.msra.mxu3 %v2309_v33 }
 0x15d   :  { %1527 = vmatpush.bf16.msra.mxu0 %v2284_v34  ;;  %1540 = vmatpush.bf16.msra.mxu1 %v2292_v35 }
 0x15e   :  { %1553 = vmatpush.bf16.msra.mxu2 %v2300_v36  ;;  %1566 = vmatpush.bf16.msra.mxu3 %v2308_v37 }
 0x161   :  { %1528 = vmatpush.bf16.msra.mxu0 %v2283_v38  ;;  %1541 = vmatpush.bf16.msra.mxu1 %v2291_v39 }
 0x162   :  { %1554 = vmatpush.bf16.msra.mxu2 %v2299_v40  ;;  %1567 = vmatpush.bf16.msra.mxu3 %v2307_v41 }
 0x164   :  { %1529 = vmatmul.bf16.vlgmr.msra.gmra.mxu0 %v333_v50  ;;  %1542 = vmatmul.bf16.vlgmr.msra.gmra.mxu1 %v334_v51 }
 0x165   :  { %1555 = vmatmul.bf16.vlgmr.msra.gmra.mxu2 %v335_v52  ;;  %1568 = vmatmul.bf16.vlgmr.msra.gmra.mxu3 %v336_v53 }
 0x1a0   :  { %v1374_v54 = vpop.f32.mrf.mxu0  ;;  %v1387_v55 = vpop.f32.mrf.mxu1 }
 0x1a1   :  { %v1375_v7 = vadd.f32 %v2317_v6, %v1374_v54 }
 0x1a3   :  { %v1388_v10 = vadd.f32 %v1387_v55, %v1375_v7 }
 0x1a7   :  { %v1400_v57 = vpop.f32.mrf.mxu2  ;;  %v1413_v59 = vpop.f32.mrf.mxu3 }
 0x1a8   :  { %v1376_v60 = vpop.f32.mrf.mxu0  ;;  %v1389_v61 = vpop.f32.mrf.mxu1  ;;  %v1401_v13 = vadd.f32 %v1400_v57, %v1388_v10 }
 0x1aa   :  { %v1414_v14 = vadd.f32 %v1413_v59, %v1401_v13 }
 0x1af   :  { %v1402_v62 = vpop.f32.mrf.mxu2  ;;  %v1415_v63 = vpop.f32.mrf.mxu3 }
 0x1b0   :  { %v1426_v0 = vpop.f32.mrf.mxu0  ;;  %v1439_v1 = vpop.f32.mrf.mxu1 }
 0x1b1   :  { %v1427_v15 = vadd.f32 %v1426_v0, %v1414_v14 }
 0x1b3   :  { %v1440_v20 = vadd.f32 %v1439_v1, %v1427_v15 }
 0x1b7   :  { %v1452_v2 = vpop.f32.mrf.mxu2  ;;  %v1465_v3 = vpop.f32.mrf.mxu3 }
 0x1b8   :  { %v1428_v4 = vpop.f32.mrf.mxu0  ;;  %v1441_v5 = vpop.f32.mrf.mxu1  ;;  %v1453_v45 = vadd.f32 %v1452_v2, %v1440_v20 }
 0x1ba   :  { %v1466_v21 = vadd.f32 %v1465_v3, %v1453_v45 }
 0x1bf   :  { %v1454_v8 = vpop.f32.mrf.mxu2  ;;  %v1467_v9 = vpop.f32.mrf.mxu3 }
 0x1c1   :  { %v1478_v11 = vpop.f32.mrf.mxu0  ;;  %v1491_v12 = vpop.f32.mrf.mxu1 }
 0x1c2   :  { %v1479_v56 = vadd.f32 %v1478_v11, %v1466_v21 }
 0x1c4   :  { %v1492_v48 = vadd.f32 %v1491_v12, %v1479_v56 }
 0x1c9   :  { %v1480_v18 = vpop.f32.mrf.mxu0  ;;  %v1493_v19 = vpop.f32.mrf.mxu1 }
 0x1ca   :  { %v1504_v16 = vpop.f32.mrf.mxu2  ;;  %v1517_v17 = vpop.f32.mrf.mxu3 }
 0x1cb   :  { %v1505_v22 = vadd.f32 %v1504_v16, %v1492_v48 }
 0x1cd   :  { %v1518_v23 = vadd.f32 %v1517_v17, %v1505_v22 }
 0x1d2   :  { %v1506_v46 = vpop.f32.mrf.mxu2  ;;  %v1519_v58 = vpop.f32.mrf.mxu3 }
 0x1e1   :  { %v1530_v24 = vpop.f32.mrf.mxu0  ;;  %v1543_v25 = vpop.f32.mrf.mxu1 }
 0x1e2   :  { %v1531_v26 = vadd.f32 %v1530_v24, %v1518_v23 }
 0x1e4   :  { %v1544_v28 = vadd.f32 %v1543_v25, %v1531_v26 }
 0x1e8   :  { %v1556_v29 = vpop.f32.mrf.mxu2  ;;  %v1569_v30 = vpop.f32.mrf.mxu3 }
 0x1e9   :  { %v1557_v31 = vadd.f32 %v1556_v29, %v1544_v28  ;;  %v1532_v32 = vpop.f32.mrf.mxu0  ;;  %v1545_v33 = vpop.f32.mrf.mxu1 }
 0x1eb   :  { %v1570_v34 = vadd.f32 %v1569_v30, %v1557_v31 }
 0x1ed   :  { %v1604_v35 = vsel %vm1603_vm3, %v1570_v34, 0.0  ;;  %v1576_v36 = vsel %vm1575_vm4, %v1570_v34, -1e+30 }
 0x1ee   :  { %v1578_v37 = vsel %vm1577_vm5, %v1576_v36, -inf }
 0x1ef   :  { %1579 = vmax.xlane.f32.xlu0 %v1578_v37 }
 0x1f0   :  { %v1558_v38 = vpop.f32.mrf.mxu2  ;;  %v1571_v39 = vpop.f32.mrf.mxu3 }
 0x262   :  { %v1580_v40 = vpop.xlane.xlu0 %1579 }
 0x263   :  { %v1581_v41 = vsub.f32 %v1576_v36, %v1580_v40 }
 0x265   :  { %v1582_v42 = vmul.f32 1.442695, %v1581_v41 }
 0x267   :  { %2318 = vpow2.f32 %v1582_v42 }
 0x26d   :  { %v2319_v44 = vpop.eup %2318 }
 0x26e   :  { %v1584_v43 = vsel %vm1575_vm4, %v2319_v44, 0.0 }
 0x26f   :  { %v1585_v47 = vsel %vm1577_vm5, %v1584_v43, 0.0 }
 0x270   :  { %1586 = vadd.xlane.f32.xlu1 %v1585_v47 }
 0x2e3   :  { %v1587_v49 = vpop.xlane.xlu1 %1586 }
 0x2e4   :  { %2320 = vrcp.f32 %v1587_v49  ;;  %v1599_v53 = vand.u32 2147483648, %v1587_v49  ;;  %v1597_v55 = vand.u32 2147483647, %v1587_v49  ;;  %vm1593_vm7 = vweird.f32 %v1587_v49 }
 0x2e6   :  { %v1600_v59 = vor.u32 1.1754944e-38, %v1599_v53  ;;  %vm1598_vm9 = vcmp.eq.f32.partialorder %v1597_v55, 8.507059e+37 }
 0x2ea   :  { %v2321_v50 = vpop.eup %2320 }
 0x2eb   :  { %v1589_v51 = vmul.f32 %v2321_v50, %v1587_v49  ;;  %vm1594_vm6 = vweird.f32 %v2321_v50 }
 0x2ec   :  { %vm1595_vm8 = vmor %vm1593_vm7, %vm1594_vm6 }
 0x2ed   :  { %v1590_v52 = vsub.f32 1.0, %v1589_v51 }
 0x2ef   :  { %v1591_v54 = vmul.f32 %v2321_v50, %v1590_v52 }
 0x2f1   :  { %v1592_v57 = vadd.f32 %v2321_v50, %v1591_v54 }
 0x2f3   :  { %v1596_v60 = vsel %vm1595_vm8, %v2321_v50, %v1592_v57 }
 0x2f4   :  { %v1601_v61 = vsel %vm1598_vm9, %v1600_v59, %v1596_v60 }
 0x2f5   :  { %v1602_v62 = vmul.f32 %v1601_v61, %v1584_v43 }
 0x2f7   :  { %v1605_v63 = vadd.f32 %v1604_v35, %v1602_v62 }
 0x2f9   :  { %1606 = vst [vmem:[%s2906_s5] sm:$0x3] %v1605_v63 }

</bundles_post_ra>
